<compile_context>
chip_gen: v7x
topology: tpu7x:2x2x1
jax: 0.10.0
libtpu: 0.0.40
codegen_flags: <defaults>
</compile_context>

<pallas_src>
import functools
from typing import NamedTuple

import jax
import jax.numpy as jnp
from jax.experimental import pallas as pl
from jax.experimental.pallas import tpu as pltpu


# --------------------------------------------------------------------------- #
# Kernel                                                                       #
# --------------------------------------------------------------------------- #
def _resblock_kernel(x_ref, w_ref, b_ref, o_ref, *, alpha, neg_slope, matmul_dtype):
    # x_ref: (tn, FDgp)   w_ref: (FDgp, FDgp)   b_ref: (1, FDgp)   o_ref: (tn, FDgp)
    x = x_ref[...]
    xm = x.astype(matmul_dtype)                               # bf16 MXU path (default)
    h = jnp.dot(xm, w_ref[...], preferred_element_type=jnp.float32)   # MXU, f32 acc
    h = h + b_ref[...]                                        # bias (f32 epilogue)
    xr = x.astype(jnp.float32)
    if alpha == 1.0:                                          # fused residual
        h = h + xr
    else:
        h = h + jnp.float32(alpha) * xr
    h = jnp.where(h >= 0, h, jnp.float32(neg_slope) * h)      # LeakyReLU (f32)
    o_ref[...] = h.astype(o_ref.dtype)


# --------------------------------------------------------------------------- #
# Parameter packing (done once, cached)                                        #
# --------------------------------------------------------------------------- #
class ResBlockParams(NamedTuple):
    w_packed: jax.Array      # (groups, group_lanes, group_lanes), matmul dtype
    b_packed: jax.Array      # (groups, 1, group_lanes), float32
    feature_num: int
    input_dim: int
    groups: int              # ng
    group_features: int      # G features packed per lane group
    group_lanes: int         # FDgp (multiple of 128)
    alpha: float
    neg_slope: float


def resblock_prepare(w, b, *, alpha=1.0, neg_slope=0.01,
                     lane_group_budget=256, matmul_dtype=jnp.bfloat16):
    """Pack (F, D, D) weights into per-group block-diagonal matrices, once.

    lane_group_budget: max lanes per block-diagonal group (256 for v6e/v7x MXU,
    use 128 on v5e).
    """
    F, D, D2 = w.shape
    assert D == D2 and b.shape == (F, 1, D)

    G = max(1, min(F, lane_group_budget // max(D, 1)))   # features per group
    ng = pl.cdiv(F, G)
    Fp = ng * G
    FDg = G * D
    FDgp = max(128, pl.cdiv(FDg, 128) * 128)             # lane-dense (mult of 128)

    w_f = w.astype(jnp.float32)
    b_f = b.astype(jnp.float32)
    if Fp != F:                                           # pad ragged last group
        w_f = jnp.concatenate([w_f, jnp.zeros((Fp - F, D, D), jnp.float32)], 0)
        b_f = jnp.concatenate([b_f, jnp.zeros((Fp - F, 1, D), jnp.float32)], 0)

    # Per-group block-diagonal: out[n, g*D+d, h*D+e] = w[n, g, d, e] * (g == h).
    w_g = w_f.reshape(ng, G, D, D)
    eye = jnp.eye(G, dtype=jnp.float32)
    w_bd = jnp.einsum("ngde,gh->ngdhe", w_g, eye).reshape(ng, FDg, FDg)
    b_g = b_f.reshape(ng, 1, FDg)

    if FDgp != FDg:                                       # conditional lane padding
        w_bd = jnp.zeros((ng, FDgp, FDgp), jnp.float32).at[:, :FDg, :FDg].set(w_bd)
        b_g = jnp.zeros((ng, 1, FDgp), jnp.float32).at[:, :, :FDg].set(b_g)

    return ResBlockParams(
        w_packed=w_bd.astype(matmul_dtype),               # bf16 by default
        b_packed=b_g,                                     # keep f32 for epilogue
        feature_num=F, input_dim=D, groups=ng, group_features=G,
        group_lanes=FDgp, alpha=float(alpha), neg_slope=float(neg_slope))


# --------------------------------------------------------------------------- #
# Activation layout helpers (only needed for (F, N, D) callers)                #
# --------------------------------------------------------------------------- #
def pack_activations(x, params):
    """(F, N, D) -> (N, groups*group_lanes). Pure transpose+reshape when no pad."""
    F, N, D = x.shape
    ng, G, FDgp = params.groups, params.group_features, params.group_lanes
    Fp, FDg = ng * G, G * D
    xt = jnp.transpose(x, (1, 0, 2))                      # (N, F, D)
    if Fp != F:
        xt = jnp.concatenate([xt, jnp.zeros((N, Fp - F, D), x.dtype)], 1)
    xp = xt.reshape(N, ng, FDg)
    if FDgp != FDg:
        xp = jnp.zeros((N, ng, FDgp), x.dtype).at[:, :, :FDg].set(xp)
    return xp.reshape(N, ng * FDgp)


def unpack_activations(y_packed, params, num_rows):
    """(N, groups*group_lanes) -> (F, N, D)."""
    F, D = params.feature_num, params.input_dim
    ng, G, FDgp = params.groups, params.group_features, params.group_lanes
    FDg = G * D
    y = y_packed[:num_rows].reshape(num_rows, ng, FDgp)[:, :, :FDg]
    y = y.reshape(num_rows, ng * G, D)[:, :F, :]
    return jnp.transpose(y, (1, 0, 2))


def _vmem_capacity_bytes():
    try:
        return int(pltpu.get_tpu_info().vmem_capacity_bytes)
    except Exception:
        return 64 << 20   # conservative (v7x per-TC physical VMEM)


# --------------------------------------------------------------------------- #
# Forward (packed layout — no HBM transpose round-trips)                       #
# --------------------------------------------------------------------------- #
def resblock_forward_packed(x_packed, params, *, max_rows_per_tile=1024):
    """x_packed: (N, groups*group_lanes) -> same shape/layout."""
    N, L = x_packed.shape
    ng, FDgp = params.groups, params.group_lanes
    if L != ng * FDgp:
        raise ValueError(f"packed lane dim {L} != groups*group_lanes {ng * FDgp}")

    x_item = jnp.dtype(x_packed.dtype).itemsize
    w_item = jnp.dtype(params.w_packed.dtype).itemsize

    row_align = max(8, 32 // x_item)                      # 8 for f32, 16 for bf16 I/O
    n_rounded = pl.cdiv(N, row_align) * row_align

    # Row tile: large (amortizes ~0.35us/step), but split >=2 ways when rows
    # allow so the 'parallel' row axis can shard across v7x's 2 TensorCores.
    tn = min(max_rows_per_tile, n_rounded)
    if n_rounded >= 2 * row_align and n_rounded // tn < 2:
        tn = max(row_align, pl.cdiv(pl.cdiv(n_rounded, 2), row_align) * row_align)

    # Per-generation VMEM budget; shrink tn if tiles + resident weight overflow.
    vmem_budget = int(0.6 * _vmem_capacity_bytes())

    def _vmem_need(rows):
        return (2 * 2 * rows * FDgp * x_item              # double-buffered x + out tiles
                + 2 * FDgp * FDgp * w_item                # weight (default double-buffered;
                + 2 * FDgp * 4)                           #   Buffered(1) would halve this —
                                                          #   negligible at FDgp<=256)
    while _vmem_need(tn) > vmem_budget and tn > row_align:
        tn = max(row_align, (tn // 2) // row_align * row_align)
    assert _vmem_need(tn) <= vmem_budget, (
        "resident block-diagonal weight does not fit the VMEM budget; "
        "lower lane_group_budget in resblock_prepare")

    num_row_tiles = pl.cdiv(n_rounded, tn)
    Np = num_row_tiles * tn

    # Conditional padding: pass through untouched when no padding is needed.
    x_in = x_packed if Np == N else (
        jnp.zeros((Np, L), x_packed.dtype).at[:N].set(x_packed))

    vmem_limit = int(min(max(2 * _vmem_need(tn), 8 << 20), vmem_budget))

    F, D = params.feature_num, params.input_dim
    cost = pl.CostEstimate(
        flops=2 * N * F * D * D,                          # useful flops (not block-diag inflated)
        transcendentals=0,
        bytes_accessed=(2 * N * L * x_item
                        + ng * FDgp * FDgp * w_item + ng * FDgp * 4))

    kernel = functools.partial(
        _resblock_kernel, alpha=params.alpha, neg_slope=params.neg_slope,
        matmul_dtype=params.w_packed.dtype)

    out = pl.pallas_call(
        kernel,
        out_shape=jax.ShapeDtypeStruct((Np, L), x_packed.dtype),
        grid_spec=pltpu.PrefetchScalarGridSpec(
            num_scalar_prefetch=0,
            # rows innermost -> weight/bias block is constant across the inner
            # loop and stays resident in VMEM for the whole group.
            grid=(ng, num_row_tiles),
            in_specs=[
                pl.BlockSpec((tn, FDgp), lambda g, n: (n, g)),          # x row tile
                pl.BlockSpec((None, FDgp, FDgp), lambda g, n: (g, 0, 0)),  # group weight
                pl.BlockSpec((None, 1, FDgp), lambda g, n: (g, 0, 0)),     # group bias
            ],
            out_specs=pl.BlockSpec((tn, FDgp), lambda g, n: (n, g)),
        ),
        compiler_params=pltpu.CompilerParams(
            dimension_semantics=("parallel", "parallel"),
            vmem_limit_bytes=vmem_limit,
        ),
        cost_estimate=cost,
    )(x_in, params.w_packed, params.b_packed)

    return out if Np == N else out[:N]


def resblock_forward(x, params, *, max_rows_per_tile=1024):
    """Module-semantics entry point: x (F, N, D) -> (F, N, D).

    Note: this does one pack (transpose) and one unpack of the activations in
    HBM around the kernel. For a memory-bound op, prefer keeping activations in
    the packed (N, groups*group_lanes) layout end to end and calling
    `resblock_forward_packed` directly (see __main__).
    """
    F, N, D = x.shape
    assert F == params.feature_num and D == params.input_dim
    xp = pack_activations(x, params)
    yp = resblock_forward_packed(xp, params, max_rows_per_tile=max_rows_per_tile)
    return unpack_activations(yp, params, N)


def resblock_reference(x, w, b, *, alpha=1.0, neg_slope=0.01):
    h = jnp.einsum("fnd,fde->fne", x, w) + b
    h = h + alpha * x
    return jnp.where(h >= 0, h, neg_slope * h)


# --------------------------------------------------------------------------- #
# Demo / self-check                                                            #
# --------------------------------------------------------------------------- #
if __name__ == "__main__":
    # ResBlock(feature_num, input_dim, dropout) — dropout is unused in forward.
    feature_num, N, input_dim = 4, 8, 32   # F*D = 128 -> one fully lane-dense group
    alpha = 1.0

    key = jax.random.PRNGKey(0)
    kx, kw, kb = jax.random.split(key, 3)

    x = jax.random.normal(kx, (feature_num, N, input_dim), dtype=jnp.float32)

    # Deterministic kaiming_uniform-like init (fan_in = input_dim, leaky_relu gain).
    gain = jnp.sqrt(2.0 / (1.0 + 0.01 ** 2))
    bound = gain * jnp.sqrt(3.0 / input_dim)
    linear_w = jax.random.uniform(
        kw, (feature_num, input_dim, input_dim),
        minval=-bound, maxval=bound, dtype=jnp.float32)
    linear_b = jax.random.normal(kb, (feature_num, 1, input_dim), dtype=jnp.float32)

    ref = resblock_reference(x, linear_w, linear_b, alpha=alpha)

    # 1) f32-matmul path (exactness check) through the module-semantics wrapper.
    params_f32 = resblock_prepare(linear_w, linear_b, alpha=alpha,
                                  matmul_dtype=jnp.float32)
    out_f32 = jax.block_until_ready(resblock_forward(x, params_f32))
    assert out_f32.shape == (feature_num, N, input_dim)
    assert jnp.allclose(out_f32, ref, atol=1e-4, rtol=1e-4), "f32 path mismatch"

    # 2) Default bf16-MXU path (f32 accumulation + f32 epilogue) via the
    #    recommended packed layout (no HBM transpose round-trips).
    params = resblock_prepare(linear_w, linear_b, alpha=alpha,
                              matmul_dtype=jnp.bfloat16)
    x_packed = pack_activations(x, params)
    out_packed = jax.block_until_ready(resblock_forward_packed(x_packed, params))
    out_bf16 = unpack_activations(out_packed, params, N)
    assert out_bf16.shape == (feature_num, N, input_dim)
    assert jnp.allclose(out_bf16, ref, atol=5e-2, rtol=5e-2), "bf16 path mismatch"

    print("KERNEL_OK")
</pallas_src>

<mosaic_0001>
module attributes {stable_mosaic.version = 11 : i64} {
  func.func @_resblock_kernel(%arg0: i32, %arg1: i32, %arg2: memref<8x128xf32, #tpu.memory_space<vmem>>, %arg3: memref<1x128x128xf32, #tpu.memory_space<vmem>>, %arg4: memref<1x1x128xf32, #tpu.memory_space<vmem>>, %arg5: memref<8x128xf32, #tpu.memory_space<vmem>>) attributes {dimension_semantics = [#tpu.dimension_semantics<parallel>, #tpu.dimension_semantics<parallel>], iteration_bounds = array<i64: 1, 1>, scalar_prefetch = 0 : i64, scratch_operands = 0 : i64, tpu.core_type = #tpu.core_type<tc>, window_params = [{transform_indices = @transform_0, window_bounds = array<i64: 8, 128>}, {transform_indices = @transform_1, window_bounds = array<i64: 1, 128, 128>}, {transform_indices = @transform_2, window_bounds = array<i64: 1, 1, 128>}, {transform_indices = @transform_3, window_bounds = array<i64: 8, 128>}]} {
    %c0 = arith.constant 0 : index
    %c0_0 = arith.constant 0 : index
    %0 = vector.load %arg2[%c0, %c0_0] : memref<8x128xf32, #tpu.memory_space<vmem>>, vector<8x128xf32>
    %c0_1 = arith.constant 0 : index
    %c0_2 = arith.constant 0 : index
    %c0_3 = arith.constant 0 : index
    %1 = vector.load %arg3[%c0_1, %c0_2, %c0_3] : memref<1x128x128xf32, #tpu.memory_space<vmem>>, vector<1x128x128xf32>
    %2 = vector.shape_cast %1 : vector<1x128x128xf32> to vector<128x128xf32>
    %cst = arith.constant dense<0.000000e+00> : vector<8x128xf32>
    %3 = tpu.matmul %0, %2, %cst {dimension_numbers = #tpu.dot_dimension_numbers<[1], [0], [0], [1], [0, 0, 1, 1], [], []>} : vector<8x128xf32>, vector<128x128xf32>, vector<8x128xf32> -> vector<8x128xf32>
    %c0_4 = arith.constant 0 : index
    %c0_5 = arith.constant 0 : index
    %c0_6 = arith.constant 0 : index
    %4 = vector.load %arg4[%c0_4, %c0_5, %c0_6] : memref<1x1x128xf32, #tpu.memory_space<vmem>>, vector<1x1x128xf32>
    %5 = vector.shape_cast %4 : vector<1x1x128xf32> to vector<1x128xf32>
    %6 = vector.broadcast %5 : vector<1x128xf32> to vector<8x128xf32>
    %7 = arith.addf %3, %6 : vector<8x128xf32>
    %8 = arith.addf %7, %0 : vector<8x128xf32>
    %cst_7 = arith.constant 0.000000e+00 : f32
    %9 = vector.broadcast %cst_7 : f32 to vector<8x128xf32>
    %10 = arith.cmpf oge, %8, %9 : vector<8x128xf32>
    %cst_8 = arith.constant 0.00999999977 : f32
    %11 = vector.broadcast %cst_8 : f32 to vector<8x128xf32>
    %12 = arith.mulf %11, %8 : vector<8x128xf32>
    %13 = arith.select %10, %8, %12 : vector<8x128xi1>, vector<8x128xf32>
    %c0_9 = arith.constant 0 : index
    %c0_10 = arith.constant 0 : index
    %14 = vector.load %arg5[%c0_9, %c0_10] : memref<8x128xf32, #tpu.memory_space<vmem>>, vector<8x128xf32>
    tpu.vector_store %arg5[%c0_9, %c0_10], %13 {strides = array<i32>} : memref<8x128xf32, #tpu.memory_space<vmem>>, vector<8x128xf32>,
    return
  }
  func.func @transform_0(%arg0: i32, %arg1: i32) -> (i32, i32) {
    %c0_i32 = arith.constant 0 : i32
    return %arg1, %arg0 : i32, i32
  }
  func.func @transform_1(%arg0: i32, %arg1: i32) -> (i32, i32, i32) {
    %c0_i32 = arith.constant 0 : i32
    %c0_i32_0 = arith.constant 0 : i32
    %c0_i32_1 = arith.constant 0 : i32
    return %arg0, %c0_i32, %c0_i32_0 : i32, i32, i32
  }
  func.func @transform_2(%arg0: i32, %arg1: i32) -> (i32, i32, i32) {
    %c0_i32 = arith.constant 0 : i32
    %c0_i32_0 = arith.constant 0 : i32
    %c0_i32_1 = arith.constant 0 : i32
    return %arg0, %c0_i32, %c0_i32_0 : i32, i32, i32
  }
  func.func @transform_3(%arg0: i32, %arg1: i32) -> (i32, i32) {
    %c0_i32 = arith.constant 0 : i32
    return %arg1, %arg0 : i32, i32
  }
}

</mosaic_0001>

<bundles_post_ra>
// kernel: tpu_custom_call.1
= control target key start
LH: loop header
LB: loop body
LE: loop exit
PB: predicated region body
PF: predicated region fallthrough
CT: control target
= control target key end

     0   :  { %8 = vsyncpa [#allocation3], 0  ;;  %s387_s0 = inlined_call_operand.hbm [shape: f32[8,128], index: 0, kind: input, shape index: {}]   ;;  %s388_s1 = inlined_call_operand.hbm [shape: f32[1,128,128], index: 1, kind: input, shape index: {}]   ;;  %s389_s2 = inlined_call_operand.vmem [shape: f32[1,1,128], index: 2, kind: input, shape index: {}]   ;;  %s390_s3 = inlined_call_operand.hbm [shape: f32[8,128], index: 3, kind: output, shape index: {}]  }
   0x1   :  { %9 = vsyncpa [#allocation6], 0 }
   0x2   :  { %10 = vsyncpa [#allocation4], 0  ;;  %s313_s12 = smov [#allocation2]   ;;  %s314_s14 = smov [#allocation5]  }
   0x3   :  { %s17_s13 = sshll.u32 %s313_s12, 4  ;;  %s26_s15 = sshll.u32 %s314_s14, 4  ;;  %s18_s13 = int_to_ptr.vmem [resolvable:$true] %s17_s13  ;;  %s341_s15 = int_to_ptr.vmem [resolvable:$true] %s26_s15 }
   0x4   :  { %s241_s18 = scalar_lea.hbm %s387_s0, 128 }
   0x5   :  { %p242_p0 = scmp.ne.s32.totalorder %s387_s0, %s241_s18  ;;  %p245_p1 = scmp.lt.u32.totalorder %s241_s18, %s387_s0 }
   0x7   :  { %p247_p2 = pnand %p245_p1, %p242_p0 }
   0x9   :  { %250 = shalt.err (!%p247_p2)
}
   0xa   :  { %s251_s23 = scalar_lea.vmem %s18_s13, 128  ;;  %p256_p4 = scmp.lt.s32.totalorder %s18_s13, %s18_s13 }
   0xb   :  { %p252_p3 = scmp.ne.s32.totalorder %s18_s13, %s251_s23  ;;  %p257_p5 = scmp.lt.s32.totalorder %s251_s23, %s251_s23 }
   0xd   :  { %p258_p6 = por %p257_p5, %p256_p4 }
   0xf   :  { %p259_p7 = pnand %p258_p6, %p252_p3 }
  0x11   :  { %262 = shalt.err (!%p259_p7)
}
  0x12   :  { %20 = dma.hbm_to_vmem [thread:$0]  %s387_s0, 128, %s18_s13, [#allocation3]  }
  0x13   :  { %s263_s28 = scalar_lea.hbm %s388_s1, 2048 }
  0x14   :  { %p264_p8 = scmp.ne.s32.totalorder %s388_s1, %s263_s28  ;;  %p267_p9 = scmp.lt.u32.totalorder %s263_s28, %s388_s1 }
  0x16   :  { %p269_p10 = pnand %p267_p9, %p264_p8 }
  0x18   :  { %272 = shalt.err (!%p269_p10)
}
  0x19   :  { %s273_s6 = scalar_lea.vmem %s341_s15, 2048  ;;  %p278_p12 = scmp.lt.s32.totalorder %s341_s15, %s341_s15 }
  0x1a   :  { %p274_p11 = scmp.ne.s32.totalorder %s341_s15, %s273_s6  ;;  %p279_p13 = scmp.lt.s32.totalorder %s273_s6, %s273_s6 }
  0x1c   :  { %p280_p0 = por %p279_p13, %p278_p12 }
  0x1e   :  { %p281_p1 = pnand %p280_p0, %p274_p11 }
  0x20   :  { %284 = shalt.err (!%p281_p1)
}
  0x21   :  { %s315_s0 = smov 128   ;;  %s316_s7 = smov 8  }
  0x22   :  { %32 = dma.hbm_to_vmem [thread:$0]  %s388_s1, 2048, %s341_s15, [#allocation6], %s315_s0, %s315_s0, %s316_s7  }
  0x23   :  { %307 = dma.done.wait [#allocation3], 128  }
  0x24   :  { %308 = vsyncadd [#allocation3], 4294967168 }
  0x25   :  { %309 = dma.done.wait [#allocation6], 2048  }
  0x26   :  { %310 = vsyncadd [#allocation6], 4294965248  ;;  %v317_v0 = vmov 0.0|0.0   ;;  %vm318_vm0 = vmmov 0   ;;  %v319_v1 = vmov 0.0   ;;  %v42_v2 = vld [vmem:[#allocation5] sm:$0xff] }
  0x27   :  { %209 = vmatprep.subr.bf16.mxu0 %v317_v0  ;;  %206 = vmatprep.mubr.msk.f32.mxu0 %vm318_vm0, %v319_v1  ;;  %v43_v3 = vld [vmem:[#allocation5 + $0x8] sm:$0xff]  ;;  %v44_v4 = vld [vmem:[#allocation5 + $0x10] sm:$0xff]  ;;  %v45_v6 = vld [vmem:[#allocation5 + $0x18] sm:$0xff]  ;;  %s320_s11 = smov [#allocation7]  }
  0x28   :  { %v210_v5 = vpack.c.bf16 %v43_v3, %v42_v2  ;;  %v213_v7 = vpack.c.bf16 %v45_v6, %v44_v4  ;;  %v46_v8 = vld [vmem:[#allocation5 + $0x20] sm:$0xff]  ;;  %v47_v9 = vld [vmem:[#allocation5 + $0x28] sm:$0xff]  ;;  %v48_v11 = vld [vmem:[#allocation5 + $0x30] sm:$0xff]  ;;  %s146_s12 = sshll.u32 %s320_s11, 4  ;;  %s147_s12 = int_to_ptr.vmem [resolvable:$true] %s146_s12 }
  0x29   :  { %v216_v10 = vpack.c.bf16 %v47_v9, %v46_v8  ;;  %v49_v12 = vld [vmem:[#allocation5 + $0x38] sm:$0xff]  ;;  %v50_v14 = vld [vmem:[#allocation5 + $0x40] sm:$0xff]  ;;  %v51_v15 = vld [vmem:[#allocation5 + $0x48] sm:$0xff]  ;;  %s285_s13 = scalar_lea.vmem %s147_s12, 128  ;;  %p290_p3 = scmp.lt.s32.totalorder %s147_s12, %s147_s12 }
  0x2a   :  { %211 = vmatpush3.bf16.msra.mxu0 %v210_v5  ;;  %v219_v13 = vpack.c.bf16 %v49_v12, %v48_v11  ;;  %v222_v16 = vpack.c.bf16 %v51_v15, %v50_v14  ;;  %v52_v17 = vld [vmem:[#allocation5 + $0x50] sm:$0xff]  ;;  %v53_v18 = vld [vmem:[#allocation5 + $0x58] sm:$0xff]  ;;  %v54_v20 = vld [vmem:[#allocation5 + $0x60] sm:$0xff]  ;;  %p286_p2 = scmp.ne.s32.totalorder %s147_s12, %s285_s13  ;;  %p291_p4 = scmp.lt.s32.totalorder %s285_s13, %s285_s13 }
  0x2b   :  { %212 = vmatprep.subr.bf16.mxu0 %v317_v0  ;;  %v225_v19 = vpack.c.bf16 %v53_v18, %v52_v17  ;;  %v55_v21 = vld [vmem:[#allocation5 + $0x68] sm:$0xff]  ;;  %v56_v23 = vld [vmem:[#allocation5 + $0x70] sm:$0xff]  ;;  %v57_v24 = vld [vmem:[#allocation5 + $0x78] sm:$0xff] }
  0x2c   :  { %v228_v22 = vpack.c.bf16 %v55_v21, %v54_v20  ;;  %v231_v25 = vpack.c.bf16 %v57_v24, %v56_v23  ;;  %v41_v26 = vld [vmem:[#allocation2] sm:$0xff]  ;;  %p292_p5 = por %p291_p4, %p290_p3 }
  0x2d   :  { %v156_v27 = vld [vmem:[%s389_s2] ss:$0 sm:$0xff] }
  0x2e   :  { %214 = vmatpush3.bf16.msra.mxu0 %v213_v7  ;;  %p293_p6 = pnand %p292_p5, %p286_p2 }
  0x2f   :  { %215 = vmatprep.subr.bf16.mxu0 %v317_v0 }
  0x32   :  { %217 = vmatpush3.bf16.msra.mxu0 %v216_v10 }
  0x33   :  { %218 = vmatprep.subr.bf16.mxu0 %v317_v0 }
  0x36   :  { %220 = vmatpush3.bf16.msra.mxu0 %v219_v13 }
  0x37   :  { %221 = vmatprep.subr.bf16.mxu0 %v317_v0 }
  0x3a   :  { %223 = vmatpush3.bf16.msra.mxu0 %v222_v16 }
  0x3b   :  { %224 = vmatprep.subr.bf16.mxu0 %v317_v0 }
  0x3e   :  { %226 = vmatpush3.bf16.msra.mxu0 %v225_v19 }
  0x3f   :  { %227 = vmatprep.subr.bf16.mxu0 %v317_v0 }
  0x42   :  { %229 = vmatpush3.bf16.msra.mxu0 %v228_v22 }
  0x43   :  { %230 = vmatprep.subr.bf16.mxu0 %v317_v0 }
  0x46   :  { %232 = vmatpush3.bf16.msra.mxu0 %v231_v25 }
  0x49   :  { %207 = vmatmul.mubr.f32.vlgmr.msra.gmra.mrb[0].mxu0 %v41_v26 }
 0x11c   :  { %v131_v28 = vpop.f32.mrb[0].mxu0 }
 0x11d   :  { %v132_v29 = vadd.f32 %v156_v27, %v131_v28  ;;  %v208_v30 = vpop.f32.mrb[1].mxu0 }
 0x11f   :  { %v135_v31 = vadd.f32 %v132_v29, %v41_v26 }
 0x121   :  { %v137_v32 = vmul.f32 0.01, %v135_v31  ;;  %vm136_vm1 = vcmp.ge.f32.partialorder %v135_v31, 0.0 }
 0x123   :  { %v138_v33 = vsel %vm136_vm1, %v135_v31, %v137_v32 }
 0x124   :  { %139 = vst [vmem:[#allocation7] sm:$0xff] %v138_v33 }
 0x125   :  { %296 = shalt.err (!%p293_p6)
}
 0x126   :  { %s297_s15 = scalar_lea.hbm %s390_s3, 128 }
 0x127   :  { %p298_p7 = scmp.ne.s32.totalorder %s390_s3, %s297_s15  ;;  %p301_p8 = scmp.lt.u32.totalorder %s297_s15, %s390_s3 }
 0x129   :  { %p303_p9 = pnand %p301_p8, %p298_p7 }
 0x12b   :  { %306 = shalt.err (!%p303_p9)
}
 0x12c   :  { %149 = dma.vmem_to_hbm [thread:$0]  %s147_s12, 128, %s390_s3, [#allocation4]  }
 0x12d   :  { %311 = dma.done.wait [#allocation4], 128  }
 0x12e   :  { %312 = vsyncadd [#allocation4], 4294967168 }
 0x12f   :  { %153 = vsyncpa [#allocation3], 1 }
 0x130   :  { %154 = vsyncpa [#allocation6], 1 }
 0x131   :  { %155 = vsyncpa [#allocation4], 1 }

</bundles_post_ra>
